<compile_context>
chip_gen: v5e
topology: v5e:2x2
jax: 0.10.0
libtpu: 0.0.40
codegen_flags: <defaults>
</compile_context>

<pallas_src>
import math
import jax
import jax.numpy as jnp
from jax.experimental import pallas as pl
from jax.experimental.pallas import tpu as pltpu

# ---- model hyper-parameters (small, consistent with the module) -------------
SEQ = 8          # sequence length
BATCH = 2        # batch size
EMBED = 32       # embed_dim
HEADS = 4        # num_heads
HEAD_DIM = EMBED // HEADS
FF = 64          # ff_dim
LN_EPS = 1e-5
NBH = BATCH * HEADS


def _layer_norm(x, gamma, beta, eps=LN_EPS):
    mu = jnp.mean(x, axis=-1, keepdims=True)
    var = jnp.mean((x - mu) ** 2, axis=-1, keepdims=True)
    return (x - mu) * jax.lax.rsqrt(var + eps) * gamma + beta


def encoder_kernel(x_ref, wqkv_ref, bqkv_ref, wo_ref, w1_ref, b1_ref, w2_ref,
                   vec_ref, o_ref):
    """Encoder-layer forward for the full (BATCH*SEQ, EMBED) token block.

    vec_ref rows: 0=bo, 1=b2, 2=gamma1, 3=beta1, 4=gamma2, 5=beta2.
    """
    x = x_ref[...].astype(jnp.float32)                            # (B*S, E)

    # Replicated-activation view over (batch, head): leading-dim reshapes only
    # (SEQ == 8 keeps the (sublane, lane) tile layout untouched).
    xn = jnp.broadcast_to(
        x.reshape(BATCH, 1, SEQ, EMBED), (BATCH, HEADS, SEQ, EMBED)
    ).reshape(NBH, SEQ, EMBED)                                    # (B*H, S, E)

    # --- fused, pre-scaled, head-major QKV projection (batched over B*H) -----
    qkv = jnp.einsum("nse,nef->nsf", xn, wqkv_ref[...],
                     preferred_element_type=jnp.float32) + bqkv_ref[...]
    q = qkv[:, :, :HEAD_DIM]                      # 1/sqrt(D) already folded in
    k = qkv[:, :, HEAD_DIM:2 * HEAD_DIM]
    v = qkv[:, :, 2 * HEAD_DIM:]

    # --- scaled dot-product attention, all (batch, head) pairs at once -------
    s = jnp.einsum("nqd,nkd->nqk", q, k, preferred_element_type=jnp.float32)
    s = s - jnp.max(s, axis=-1, keepdims=True)
    p = jnp.exp(s)
    p = p / jnp.sum(p, axis=-1, keepdims=True)
    ctx = jnp.einsum("nqk,nkd->nqd", p, v, preferred_element_type=jnp.float32)

    # --- output projection: per-(batch, head) matmul + head-sum --------------
    attn = jnp.einsum("nsd,nde->nse", ctx, wo_ref[...],
                      preferred_element_type=jnp.float32)          # (B*H, S, E)
    attn = attn.reshape(BATCH, HEADS, SEQ, EMBED).sum(axis=1)      # (B, S, E)
    attn = attn.reshape(BATCH * SEQ, EMBED) + vec_ref[0:1, :]      # + bo

    # TODO(synk): nn.Dropout(p=0.1) is modeled as identity (inference mode).
    h1 = _layer_norm(x + attn, vec_ref[2:3, :], vec_ref[3:4, :])

    # --- feed-forward network -------------------------------------------------
    f = jnp.dot(h1, w1_ref[...], preferred_element_type=jnp.float32) + b1_ref[...]
    f = jnp.maximum(f, 0.0)
    f = jnp.dot(f, w2_ref[...], preferred_element_type=jnp.float32) + vec_ref[1:2, :]

    h2 = _layer_norm(h1 + f, vec_ref[4:5, :], vec_ref[5:6, :])
    o_ref[...] = h2.astype(o_ref.dtype)


# ---- host-side operand preparation (transposes / scale folding / packing) ---
def _per_head_cols(w):
    # w: (E_out, E_in) PyTorch Linear weight -> (H, E_in, D) pre-transposed cols
    return w.T.reshape(EMBED, HEADS, HEAD_DIM).transpose(1, 0, 2)


def _prepare_operands(params):
    scale = 1.0 / math.sqrt(HEAD_DIM)
    wq, wk, wv = (params["wqkv"][i * EMBED:(i + 1) * EMBED] for i in range(3))
    bq, bk, bv = (params["bqkv"][i * EMBED:(i + 1) * EMBED] for i in range(3))
    wqkv_h = jnp.concatenate(
        [_per_head_cols(wq) * scale, _per_head_cols(wk), _per_head_cols(wv)],
        axis=-1)                                                   # (H, E, 3D)
    bqkv_h = jnp.concatenate(
        [(bq * scale).reshape(HEADS, HEAD_DIM),
         bk.reshape(HEADS, HEAD_DIM),
         bv.reshape(HEADS, HEAD_DIM)],
        axis=-1).reshape(HEADS, 1, 3 * HEAD_DIM)                   # (H, 1, 3D)
    wo_h = params["wo"].T.reshape(HEADS, HEAD_DIM, EMBED)          # (H, D, E)

    # kernel batch index n = b*HEADS + h -> tile per-head weights over batch
    wqkv_bh = jnp.tile(wqkv_h, (BATCH, 1, 1))                      # (B*H, E, 3D)
    bqkv_bh = jnp.tile(bqkv_h, (BATCH, 1, 1))                      # (B*H, 1, 3D)
    wo_bh = jnp.tile(wo_h, (BATCH, 1, 1))                          # (B*H, D, E)

    w1t = params["w1"].T                                           # (E, FF)
    b1 = params["b1"].reshape(1, FF)
    w2t = params["w2"].T                                           # (FF, E)
    vecs = jnp.stack([params["bo"], params["b2"], params["g1"], params["bt1"],
                      params["g2"], params["bt2"]], axis=0)        # (6, E)
    return wqkv_bh, bqkv_bh, wo_bh, w1t, b1, w2t, vecs


def transformer_encoder_layer(x, params):
    """x: (S, B, E) float32, matching nn.MultiheadAttention's default layout."""
    S, B, E = x.shape
    x2 = jnp.transpose(x, (1, 0, 2)).reshape(B * S, E)            # batch-major rows

    weight_args = _prepare_operands(params)

    def full_spec(shape):
        return pl.BlockSpec(shape, lambda i: (0,) * len(shape))

    out2 = pl.pallas_call(
        encoder_kernel,
        out_shape=jax.ShapeDtypeStruct((B * S, E), x.dtype),
        grid=(1,),                                      # single step: tiny problem
        in_specs=[full_spec((B * S, E))]
                 + [full_spec(w.shape) for w in weight_args],
        out_specs=full_spec((B * S, E)),
        compiler_params=pltpu.CompilerParams(
            dimension_semantics=("arbitrary",)),
    )(x2, *weight_args)

    return jnp.transpose(out2.reshape(B, S, E), (1, 0, 2))        # back to (S, B, E)


# ---- pure-JAX reference (PyTorch-layout weights, same math) ------------------
def reference(x, params):
    S, B, E = x.shape
    x2 = jnp.transpose(x, (1, 0, 2)).reshape(B * S, E)
    qkv = x2 @ params["wqkv"].T + params["bqkv"]
    q, k, v = qkv[:, :E], qkv[:, E:2 * E], qkv[:, 2 * E:]

    def heads(t):
        return t.reshape(B, S, HEADS, HEAD_DIM).transpose(0, 2, 1, 3)

    qh, kh, vh = heads(q) / math.sqrt(HEAD_DIM), heads(k), heads(v)
    s = jnp.einsum("bhqd,bhkd->bhqk", qh, kh)
    p = jax.nn.softmax(s, axis=-1)
    ctx = jnp.einsum("bhqk,bhkd->bhqd", p, vh).transpose(0, 2, 1, 3).reshape(B * S, E)
    attn = ctx @ params["wo"].T + params["bo"]
    h1 = _layer_norm(x2 + attn, params["g1"], params["bt1"])
    f = jnp.maximum(h1 @ params["w1"].T + params["b1"], 0.0)
    f = f @ params["w2"].T + params["b2"]
    h2 = _layer_norm(h1 + f, params["g2"], params["bt2"])
    return jnp.transpose(h2.reshape(B, S, E), (1, 0, 2))


def init_params(key):
    ks = jax.random.split(key, 8)
    std = 0.02
    return {
        "wqkv": jax.random.normal(ks[0], (3 * EMBED, EMBED), jnp.float32) * std,
        "bqkv": jax.random.normal(ks[1], (3 * EMBED,), jnp.float32) * std,
        "wo":   jax.random.normal(ks[2], (EMBED, EMBED), jnp.float32) * std,
        "bo":   jax.random.normal(ks[3], (EMBED,), jnp.float32) * std,
        "w1":   jax.random.normal(ks[4], (FF, EMBED), jnp.float32) * std,
        "b1":   jax.random.normal(ks[5], (FF,), jnp.float32) * std,
        "w2":   jax.random.normal(ks[6], (EMBED, FF), jnp.float32) * std,
        "b2":   jax.random.normal(ks[7], (EMBED,), jnp.float32) * std,
        "g1":   jnp.ones((EMBED,), jnp.float32),
        "bt1":  jnp.zeros((EMBED,), jnp.float32),
        "g2":   jnp.ones((EMBED,), jnp.float32),
        "bt2":  jnp.zeros((EMBED,), jnp.float32),
    }


if __name__ == "__main__":
    key = jax.random.PRNGKey(0)
    kx, kp = jax.random.split(key)
    x = jax.random.normal(kx, (SEQ, BATCH, EMBED), jnp.float32)   # (S, B, E)
    params = init_params(kp)

    out = transformer_encoder_layer(x, params)
    out = jax.block_until_ready(out)

    ref = reference(x, params)
    assert out.shape == (SEQ, BATCH, EMBED)
    assert jnp.allclose(out, ref, atol=1e-4, rtol=1e-4), "mismatch vs reference"
    print("KERNEL_OK")
</pallas_src>

<mosaic_0001>
module attributes {stable_mosaic.version = 11 : i64} {
  func.func @encoder_kernel(%arg0: i32, %arg1: memref<16x32xf32, #tpu.memory_space<vmem>>, %arg2: memref<8x32x24xf32, #tpu.memory_space<vmem>>, %arg3: memref<8x1x24xf32, #tpu.memory_space<vmem>>, %arg4: memref<8x8x32xf32, #tpu.memory_space<vmem>>, %arg5: memref<32x64xf32, #tpu.memory_space<vmem>>, %arg6: memref<1x64xf32, #tpu.memory_space<vmem>>, %arg7: memref<64x32xf32, #tpu.memory_space<vmem>>, %arg8: memref<6x32xf32, #tpu.memory_space<vmem>>, %arg9: memref<16x32xf32, #tpu.memory_space<vmem>>) attributes {dimension_semantics = [#tpu.dimension_semantics<arbitrary>], iteration_bounds = array<i64: 1>, scalar_prefetch = 0 : i64, scratch_operands = 0 : i64, tpu.core_type = #tpu.core_type<tc>, window_params = [{pipeline_mode = #tpu.pipeline_mode<synchronous>, transform_indices = @transform_0, window_bounds = array<i64: 16, 32>}, {pipeline_mode = #tpu.pipeline_mode<synchronous>, transform_indices = @transform_1, window_bounds = array<i64: 8, 32, 24>}, {pipeline_mode = #tpu.pipeline_mode<synchronous>, transform_indices = @transform_2, window_bounds = array<i64: 8, 1, 24>}, {pipeline_mode = #tpu.pipeline_mode<synchronous>, transform_indices = @transform_3, window_bounds = array<i64: 8, 8, 32>}, {pipeline_mode = #tpu.pipeline_mode<synchronous>, transform_indices = @transform_4, window_bounds = array<i64: 32, 64>}, {pipeline_mode = #tpu.pipeline_mode<synchronous>, transform_indices = @transform_5, window_bounds = array<i64: 1, 64>}, {pipeline_mode = #tpu.pipeline_mode<synchronous>, transform_indices = @transform_6, window_bounds = array<i64: 64, 32>}, {pipeline_mode = #tpu.pipeline_mode<synchronous>, transform_indices = @transform_7, window_bounds = array<i64: 6, 32>}, {pipeline_mode = #tpu.pipeline_mode<synchronous>, transform_indices = @transform_8, window_bounds = array<i64: 16, 32>}]} {
    %c0 = arith.constant 0 : index
    %c0_0 = arith.constant 0 : index
    %0 = vector.load %arg1[%c0, %c0_0] : memref<16x32xf32, #tpu.memory_space<vmem>>, vector<16x32xf32>
    %1 = vector.shape_cast %0 : vector<16x32xf32> to vector<2x1x8x32xf32>
    %2 = vector.shape_cast %1 : vector<2x1x8x32xf32> to vector<2x1x8x32xf32>
    %3 = vector.broadcast %2 : vector<2x1x8x32xf32> to vector<2x4x8x32xf32>
    %4 = vector.shape_cast %3 : vector<2x4x8x32xf32> to vector<8x8x32xf32>
    %c0_1 = arith.constant 0 : index
    %c0_2 = arith.constant 0 : index
    %c0_3 = arith.constant 0 : index
    %5 = vector.load %arg2[%c0_1, %c0_2, %c0_3] : memref<8x32x24xf32, #tpu.memory_space<vmem>>, vector<8x32x24xf32>
    "tpu.trace_start"() <{level = 10 : i32, message = "nse,nef->nsf"}> : () -> ()
    %cst = arith.constant dense<0.000000e+00> : vector<8x8x24xf32>
    %6 = tpu.matmul %4, %5, %cst {dimension_numbers = #tpu.dot_dimension_numbers<[2], [1], [1], [2], [0, 0, 0, 1, 1, 2], [0], [0]>} : vector<8x8x32xf32>, vector<8x32x24xf32>, vector<8x8x24xf32> -> vector<8x8x24xf32>
    "tpu.trace_stop"() : () -> ()
    %c0_4 = arith.constant 0 : index
    %c0_5 = arith.constant 0 : index
    %c0_6 = arith.constant 0 : index
    %7 = vector.load %arg3[%c0_4, %c0_5, %c0_6] : memref<8x1x24xf32, #tpu.memory_space<vmem>>, vector<8x1x24xf32>
    %8 = vector.broadcast %7 : vector<8x1x24xf32> to vector<8x8x24xf32>
    %9 = arith.addf %6, %8 : vector<8x8x24xf32>
    %10 = vector.extract_strided_slice %9 {offsets = [0, 0, 0], sizes = [8, 8, 8], strides = [1, 1, 1]} : vector<8x8x24xf32> to vector<8x8x8xf32>
    %11 = vector.extract_strided_slice %9 {offsets = [0, 0, 8], sizes = [8, 8, 8], strides = [1, 1, 1]} : vector<8x8x24xf32> to vector<8x8x8xf32>
    %12 = vector.extract_strided_slice %9 {offsets = [0, 0, 16], sizes = [8, 8, 8], strides = [1, 1, 1]} : vector<8x8x24xf32> to vector<8x8x8xf32>
    "tpu.trace_start"() <{level = 10 : i32, message = "nqd,nkd->nqk"}> : () -> ()
    %cst_7 = arith.constant dense<0.000000e+00> : vector<8x8x8xf32>
    %13 = tpu.matmul %10, %11, %cst_7 {dimension_numbers = #tpu.dot_dimension_numbers<[2], [2], [1], [1], [0, 0, 0, 1, 1, 1], [0], [0]>} : vector<8x8x8xf32>, vector<8x8x8xf32>, vector<8x8x8xf32> -> vector<8x8x8xf32>
    "tpu.trace_stop"() : () -> ()
    %cst_8 = arith.constant dense<0xFF800000> : vector<8x8xf32>
    %14 = vector.multi_reduction <maximumf>, %13, %cst_8 [2] : vector<8x8x8xf32> to vector<8x8xf32>
    %15 = vector.shape_cast %14 : vector<8x8xf32> to vector<8x8x1xf32>
    %16 = vector.broadcast %15 : vector<8x8x1xf32> to vector<8x8x8xf32>
    %17 = arith.subf %13, %16 : vector<8x8x8xf32>
    %18 = math.exp %17 : vector<8x8x8xf32>
    %cst_9 = arith.constant dense<0.000000e+00> : vector<8x8xf32>
    %19 = vector.multi_reduction <add>, %18, %cst_9 [2] : vector<8x8x8xf32> to vector<8x8xf32>
    %20 = vector.shape_cast %19 : vector<8x8xf32> to vector<8x8x1xf32>
    %21 = vector.broadcast %20 : vector<8x8x1xf32> to vector<8x8x8xf32>
    %22 = arith.divf %18, %21 : vector<8x8x8xf32>
    "tpu.trace_start"() <{level = 10 : i32, message = "nqk,nkd->nqd"}> : () -> ()
    %cst_10 = arith.constant dense<0.000000e+00> : vector<8x8x8xf32>
    %23 = tpu.matmul %22, %12, %cst_10 {dimension_numbers = #tpu.dot_dimension_numbers<[2], [1], [1], [2], [0, 0, 0, 1, 1, 2], [0], [0]>} : vector<8x8x8xf32>, vector<8x8x8xf32>, vector<8x8x8xf32> -> vector<8x8x8xf32>
    "tpu.trace_stop"() : () -> ()
    %c0_11 = arith.constant 0 : index
    %c0_12 = arith.constant 0 : index
    %c0_13 = arith.constant 0 : index
    %24 = vector.load %arg4[%c0_11, %c0_12, %c0_13] : memref<8x8x32xf32, #tpu.memory_space<vmem>>, vector<8x8x32xf32>
    "tpu.trace_start"() <{level = 10 : i32, message = "nsd,nde->nse"}> : () -> ()
    %cst_14 = arith.constant dense<0.000000e+00> : vector<8x8x32xf32>
    %25 = tpu.matmul %23, %24, %cst_14 {dimension_numbers = #tpu.dot_dimension_numbers<[2], [1], [1], [2], [0, 0, 0, 1, 1, 2], [0], [0]>} : vector<8x8x8xf32>, vector<8x8x32xf32>, vector<8x8x32xf32> -> vector<8x8x32xf32>
    "tpu.trace_stop"() : () -> ()
    %26 = vector.shape_cast %25 : vector<8x8x32xf32> to vector<2x4x8x32xf32>
    %cst_15 = arith.constant dense<0.000000e+00> : vector<2x8x32xf32>
    %27 = vector.multi_reduction <add>, %26, %cst_15 [1] : vector<2x4x8x32xf32> to vector<2x8x32xf32>
    %28 = vector.shape_cast %27 : vector<2x8x32xf32> to vector<16x32xf32>
    %c0_16 = arith.constant 0 : index
    %c0_17 = arith.constant 0 : index
    %29 = vector.load %arg8[%c0_16, %c0_17] : memref<6x32xf32, #tpu.memory_space<vmem>>, vector<1x32xf32>
    %30 = vector.broadcast %29 : vector<1x32xf32> to vector<16x32xf32>
    %31 = arith.addf %28, %30 : vector<16x32xf32>
    %32 = arith.addf %0, %31 : vector<16x32xf32>
    %c2 = arith.constant 2 : index
    %c0_18 = arith.constant 0 : index
    %33 = vector.load %arg8[%c2, %c0_18] : memref<6x32xf32, #tpu.memory_space<vmem>>, vector<1x32xf32>
    %c3 = arith.constant 3 : index
    %c0_19 = arith.constant 0 : index
    %34 = vector.load %arg8[%c3, %c0_19] : memref<6x32xf32, #tpu.memory_space<vmem>>, vector<1x32xf32>
    %cst_20 = arith.constant dense<0.000000e+00> : vector<16xf32>
    %35 = vector.multi_reduction <add>, %32, %cst_20 [1] : vector<16x32xf32> to vector<16xf32>
    %36 = vector.shape_cast %35 : vector<16xf32> to vector<16x1xf32>
    %cst_21 = arith.constant 3.200000e+01 : f32
    %37 = vector.broadcast %cst_21 : f32 to vector<16x1xf32>
    %38 = arith.divf %36, %37 : vector<16x1xf32>
    %39 = vector.broadcast %38 : vector<16x1xf32> to vector<16x32xf32>
    %40 = arith.subf %32, %39 : vector<16x32xf32>
    %41 = arith.mulf %40, %40 : vector<16x32xf32>
    %cst_22 = arith.constant dense<0.000000e+00> : vector<16xf32>
    %42 = vector.multi_reduction <add>, %41, %cst_22 [1] : vector<16x32xf32> to vector<16xf32>
    %43 = vector.shape_cast %42 : vector<16xf32> to vector<16x1xf32>
    %cst_23 = arith.constant 3.200000e+01 : f32
    %44 = vector.broadcast %cst_23 : f32 to vector<16x1xf32>
    %45 = arith.divf %43, %44 : vector<16x1xf32>
    %46 = vector.broadcast %38 : vector<16x1xf32> to vector<16x32xf32>
    %47 = arith.subf %32, %46 : vector<16x32xf32>
    %cst_24 = arith.constant 9.99999974E-6 : f32
    %48 = vector.broadcast %cst_24 : f32 to vector<16x1xf32>
    %49 = arith.addf %45, %48 : vector<16x1xf32>
    %50 = math.rsqrt %49 : vector<16x1xf32>
    %51 = vector.broadcast %50 : vector<16x1xf32> to vector<16x32xf32>
    %52 = arith.mulf %47, %51 : vector<16x32xf32>
    %53 = vector.broadcast %33 : vector<1x32xf32> to vector<16x32xf32>
    %54 = arith.mulf %52, %53 : vector<16x32xf32>
    %55 = vector.broadcast %34 : vector<1x32xf32> to vector<16x32xf32>
    %56 = arith.addf %54, %55 : vector<16x32xf32>
    %c0_25 = arith.constant 0 : index
    %c0_26 = arith.constant 0 : index
    %57 = vector.load %arg5[%c0_25, %c0_26] : memref<32x64xf32, #tpu.memory_space<vmem>>, vector<32x64xf32>
    %cst_27 = arith.constant dense<0.000000e+00> : vector<16x64xf32>
    %58 = tpu.matmul %56, %57, %cst_27 {dimension_numbers = #tpu.dot_dimension_numbers<[1], [0], [0], [1], [0, 0, 1, 1], [], []>} : vector<16x32xf32>, vector<32x64xf32>, vector<16x64xf32> -> vector<16x64xf32>
    %c0_28 = arith.constant 0 : index
    %c0_29 = arith.constant 0 : index
    %59 = vector.load %arg6[%c0_28, %c0_29] : memref<1x64xf32, #tpu.memory_space<vmem>>, vector<1x64xf32>
    %60 = vector.broadcast %59 : vector<1x64xf32> to vector<16x64xf32>
    %61 = arith.addf %58, %60 : vector<16x64xf32>
    %cst_30 = arith.constant 0.000000e+00 : f32
    %62 = vector.broadcast %cst_30 : f32 to vector<16x64xf32>
    %63 = arith.maximumf %61, %62 : vector<16x64xf32>
    %c0_31 = arith.constant 0 : index
    %c0_32 = arith.constant 0 : index
    %64 = vector.load %arg7[%c0_31, %c0_32] : memref<64x32xf32, #tpu.memory_space<vmem>>, vector<64x32xf32>
    %cst_33 = arith.constant dense<0.000000e+00> : vector<16x32xf32>
    %65 = tpu.matmul %63, %64, %cst_33 {dimension_numbers = #tpu.dot_dimension_numbers<[1], [0], [0], [1], [0, 0, 1, 1], [], []>} : vector<16x64xf32>, vector<64x32xf32>, vector<16x32xf32> -> vector<16x32xf32>
    %c1 = arith.constant 1 : index
    %c0_34 = arith.constant 0 : index
    %66 = vector.load %arg8[%c1, %c0_34] : memref<6x32xf32, #tpu.memory_space<vmem>>, vector<1x32xf32>
    %67 = vector.broadcast %66 : vector<1x32xf32> to vector<16x32xf32>
    %68 = arith.addf %65, %67 : vector<16x32xf32>
    %69 = arith.addf %56, %68 : vector<16x32xf32>
    %c4 = arith.constant 4 : index
    %c0_35 = arith.constant 0 : index
    %70 = vector.load %arg8[%c4, %c0_35] : memref<6x32xf32, #tpu.memory_space<vmem>>, vector<1x32xf32>
    %c5 = arith.constant 5 : index
    %c0_36 = arith.constant 0 : index
    %71 = vector.load %arg8[%c5, %c0_36] : memref<6x32xf32, #tpu.memory_space<vmem>>, vector<1x32xf32>
    %cst_37 = arith.constant dense<0.000000e+00> : vector<16xf32>
    %72 = vector.multi_reduction <add>, %69, %cst_37 [1] : vector<16x32xf32> to vector<16xf32>
    %73 = vector.shape_cast %72 : vector<16xf32> to vector<16x1xf32>
    %cst_38 = arith.constant 3.200000e+01 : f32
    %74 = vector.broadcast %cst_38 : f32 to vector<16x1xf32>
    %75 = arith.divf %73, %74 : vector<16x1xf32>
    %76 = vector.broadcast %75 : vector<16x1xf32> to vector<16x32xf32>
    %77 = arith.subf %69, %76 : vector<16x32xf32>
    %78 = arith.mulf %77, %77 : vector<16x32xf32>
    %cst_39 = arith.constant dense<0.000000e+00> : vector<16xf32>
    %79 = vector.multi_reduction <add>, %78, %cst_39 [1] : vector<16x32xf32> to vector<16xf32>
    %80 = vector.shape_cast %79 : vector<16xf32> to vector<16x1xf32>
    %cst_40 = arith.constant 3.200000e+01 : f32
    %81 = vector.broadcast %cst_40 : f32 to vector<16x1xf32>
    %82 = arith.divf %80, %81 : vector<16x1xf32>
    %83 = vector.broadcast %75 : vector<16x1xf32> to vector<16x32xf32>
    %84 = arith.subf %69, %83 : vector<16x32xf32>
    %cst_41 = arith.constant 9.99999974E-6 : f32
    %85 = vector.broadcast %cst_41 : f32 to vector<16x1xf32>
    %86 = arith.addf %82, %85 : vector<16x1xf32>
    %87 = math.rsqrt %86 : vector<16x1xf32>
    %88 = vector.broadcast %87 : vector<16x1xf32> to vector<16x32xf32>
    %89 = arith.mulf %84, %88 : vector<16x32xf32>
    %90 = vector.broadcast %70 : vector<1x32xf32> to vector<16x32xf32>
    %91 = arith.mulf %89, %90 : vector<16x32xf32>
    %92 = vector.broadcast %71 : vector<1x32xf32> to vector<16x32xf32>
    %93 = arith.addf %91, %92 : vector<16x32xf32>
    %c0_42 = arith.constant 0 : index
    %c0_43 = arith.constant 0 : index
    %94 = vector.load %arg9[%c0_42, %c0_43] : memref<16x32xf32, #tpu.memory_space<vmem>>, vector<16x32xf32>
    tpu.vector_store %arg9[%c0_42, %c0_43], %93 {strides = array<i32>} : memref<16x32xf32, #tpu.memory_space<vmem>>, vector<16x32xf32>,
    return
  }
  func.func @transform_0(%arg0: i32) -> (i32, i32) {
    %c0_i32 = arith.constant 0 : i32
    %c0_i32_0 = arith.constant 0 : i32
    %c0_i32_1 = arith.constant 0 : i32
    return %c0_i32, %c0_i32_0 : i32, i32
  }
  func.func @transform_1(%arg0: i32) -> (i32, i32, i32) {
    %c0_i32 = arith.constant 0 : i32
    %c0_i32_0 = arith.constant 0 : i32
    %c0_i32_1 = arith.constant 0 : i32
    %c0_i32_2 = arith.constant 0 : i32
    return %c0_i32, %c0_i32_0, %c0_i32_1 : i32, i32, i32
  }
  func.func @transform_2(%arg0: i32) -> (i32, i32, i32) {
    %c0_i32 = arith.constant 0 : i32
    %c0_i32_0 = arith.constant 0 : i32
    %c0_i32_1 = arith.constant 0 : i32
    %c0_i32_2 = arith.constant 0 : i32
    return %c0_i32, %c0_i32_0, %c0_i32_1 : i32, i32, i32
  }
  func.func @transform_3(%arg0: i32) -> (i32, i32, i32) {
    %c0_i32 = arith.constant 0 : i32
    %c0_i32_0 = arith.constant 0 : i32
    %c0_i32_1 = arith.constant 0 : i32
    %c0_i32_2 = arith.constant 0 : i32
    return %c0_i32, %c0_i32_0, %c0_i32_1 : i32, i32, i32
  }
  func.func @transform_4(%arg0: i32) -> (i32, i32) {
    %c0_i32 = arith.constant 0 : i32
    %c0_i32_0 = arith.constant 0 : i32
    %c0_i32_1 = arith.constant 0 : i32
    return %c0_i32, %c0_i32_0 : i32, i32
  }
  func.func @transform_5(%arg0: i32) -> (i32, i32) {
    %c0_i32 = arith.constant 0 : i32
    %c0_i32_0 = arith.constant 0 : i32
    %c0_i32_1 = arith.constant 0 : i32
    return %c0_i32, %c0_i32_0 : i32, i32
  }
  func.func @transform_6(%arg0: i32) -> (i32, i32) {
    %c0_i32 = arith.constant 0 : i32
    %c0_i32_0 = arith.constant 0 : i32
    %c0_i32_1 = arith.constant 0 : i32
    return %c0_i32, %c0_i32_0 : i32, i32
  }
  func.func @transform_7(%arg0: i32) -> (i32, i32) {
    %c0_i32 = arith.constant 0 : i32
    %c0_i32_0 = arith.constant 0 : i32
    %c0_i32_1 = arith.constant 0 : i32
    return %c0_i32, %c0_i32_0 : i32, i32
  }
  func.func @transform_8(%arg0: i32) -> (i32, i32) {
    %c0_i32 = arith.constant 0 : i32
    %c0_i32_0 = arith.constant 0 : i32
    %c0_i32_1 = arith.constant 0 : i32
    return %c0_i32, %c0_i32_0 : i32, i32
  }
}

</mosaic_0001>

<bundles_post_ra>
// kernel: tpu_custom_call.1
= control target key start
LH: loop header
LB: loop body
LE: loop exit
PB: predicated region body
PF: predicated region fallthrough
CT: control target
= control target key end

     0   :  { %vm96_vm0 = vcmask 261120   ;;  %s2038_s0 = inlined_call_operand.vmem [shape: f32[16,32], index: 0, kind: input, shape index: {}]   ;;  %s2039_s1 = inlined_call_operand.vmem [shape: f32[8,32,24], index: 1, kind: input, shape index: {}]   ;;  %s2040_s2 = inlined_call_operand.vmem [shape: f32[8,1,24], index: 2, kind: input, shape index: {}]   ;;  %s2041_s3 = inlined_call_operand.vmem [shape: f32[8,8,32], index: 3, kind: input, shape index: {}]   ;;  %s2042_s4 = inlined_call_operand.vmem [shape: f32[32,64], index: 4, kind: input, shape index: {}]   ;;  %s2043_s5 = inlined_call_operand.vmem [shape: f32[1,64], index: 5, kind: input, shape index: {}]   ;;  %s2044_s6 = inlined_call_operand.vmem [shape: f32[64,32], index: 6, kind: input, shape index: {}]   ;;  %s2045_s7 = inlined_call_operand.vmem [shape: f32[6,32], index: 7, kind: input, shape index: {}]   ;;  %s2046_s8 = inlined_call_operand.hbm [shape: f32[16,32], index: 8, kind: output, shape index: {}]  }
   0x1   :  { %v35_v0 = vld [vmem:[%s2039_s1 + $0x18] sm:$0xff]  ;;  %v34_v2 = vld [vmem:[%s2039_s1 + $0x10] sm:$0xff]  ;;  %v33_v4 = vld [vmem:[%s2039_s1 + $0x8] sm:$0xff] }
   0x2   :  { %v39_v1 = vld [vmem:[%s2039_s1 + $0x38] sm:$0xff]  ;;  %112 = vmatpush.msra.mxu3 %v35_v0  ;;  %v38_v3 = vld [vmem:[%s2039_s1 + $0x30] sm:$0xff]  ;;  %v37_v5 = vld [vmem:[%s2039_s1 + $0x28] sm:$0xff] }
   0x3   :  { %132 = vmatpush.msra.mxu2 %v39_v1  ;;  %v32_v6 = vld [vmem:[%s2039_s1] sm:$0xff]  ;;  %v43_v9 = vld [vmem:[%s2039_s1 + $0x58] sm:$0xff]  ;;  %v42_v11 = vld [vmem:[%s2039_s1 + $0x50] sm:$0xff] }
   0x4   :  { %113 = vmatpush.msra.mxu3 %v34_v2  ;;  %v36_v7 = vld [vmem:[%s2039_s1 + $0x20] sm:$0xff]  ;;  %v47_v10 = vld [vmem:[%s2039_s1 + $0x78] sm:$0xff]  ;;  %v46_v12 = vld [vmem:[%s2039_s1 + $0x70] sm:$0xff] }
   0x5   :  { %133 = vmatpush.msra.mxu2 %v38_v3  ;;  %v1535_v8 = vld [vmem:[%s2038_s0] sm:$0xff]  ;;  %v51_v13 = vld [vmem:[%s2039_s1 + $0x98] sm:$0xff]  ;;  %v41_v14 = vld [vmem:[%s2039_s1 + $0x48] sm:$0xff] }
   0x6   :  { %114 = vmatpush.msra.mxu3 %v33_v4  ;;  %v45_v15 = vld [vmem:[%s2039_s1 + $0x68] sm:$0xff]  ;;  %v50_v16 = vld [vmem:[%s2039_s1 + $0x90] sm:$0xff]  ;;  %v40_v17 = vld [vmem:[%s2039_s1 + $0x40] sm:$0xff]  ;;  %195 = vmatpush.msra.mxu0 %v51_v13 }
   0x7   :  { %134 = vmatpush.msra.mxu2 %v37_v5  ;;  %v44_v18 = vld [vmem:[%s2039_s1 + $0x60] sm:$0xff]  ;;  %v55_v19 = vld [vmem:[%s2039_s1 + $0xb8] sm:$0xff]  ;;  %v49_v20 = vld [vmem:[%s2039_s1 + $0x88] sm:$0xff] }
   0x8   :  { %115 = vmatpush.msra.mxu3 %v32_v6  ;;  %v54_v21 = vld [vmem:[%s2039_s1 + $0xb0] sm:$0xff]  ;;  %v59_v22 = vld [vmem:[%s2039_s1 + $0xd8] sm:$0xff]  ;;  %196 = vmatpush.msra.mxu0 %v50_v16  ;;  %v48_v24 = vld [vmem:[%s2039_s1 + $0x80] sm:$0xff] }
   0x9   :  { %135 = vmatpush.msra.mxu2 %v36_v7  ;;  %1304 = vmatmul.msk.f32.vlgmr.msra.gmra.mxu3 %vm96_vm0, %v1535_v8  ;;  %v63_v23 = vld [vmem:[%s2039_s1 + $0xf8] sm:$0xff]  ;;  %v53_v25 = vld [vmem:[%s2039_s1 + $0xa8] sm:$0xff]  ;;  %v58_v26 = vld [vmem:[%s2039_s1 + $0xd0] sm:$0xff] }
   0xa   :  { %1305 = vmatmul.msk.f32.vlgmr.msra.gmra.mxu2 %vm96_vm0, %v1535_v8  ;;  %172 = vmatpush.msrb.mxu3 %v47_v10  ;;  %v62_v27 = vld [vmem:[%s2039_s1 + $0xf0] sm:$0xff] }
   0xb   :  { %152 = vmatpush.msrb.mxu2 %v43_v9  ;;  %215 = vmatpush.msra.mxu1 %v55_v19 }
   0xc   :  { %173 = vmatpush.msrb.mxu3 %v46_v12  ;;  %197 = vmatpush.msra.mxu0 %v49_v20 }
   0xd   :  { %153 = vmatpush.msrb.mxu2 %v42_v11  ;;  %216 = vmatpush.msra.mxu1 %v54_v21 }
   0xe   :  { %174 = vmatpush.msrb.mxu3 %v45_v15 }
   0xf   :  { %154 = vmatpush.msrb.mxu2 %v41_v14 }
  0x10   :  { %175 = vmatpush.msrb.mxu3 %v44_v18 }
  0x11   :  { %155 = vmatpush.msrb.mxu2 %v40_v17  ;;  %1307 = vmatmul.msk.f32.vlgmr.msrb.gmra.mxu3 %vm96_vm0, %v1535_v8 }
  0x12   :  { %1306 = vmatmul.msk.f32.vlgmr.msrb.gmra.mxu2 %vm96_vm0, %v1535_v8 }
  0x13   :  { %13 = vsyncpa [#allocation3], 0  ;;  %235 = vmatpush.msra.mxu2 %v59_v22  ;;  %255 = vmatpush.msra.mxu3 %v63_v23  ;;  %v52_v28 = vld [vmem:[%s2039_s1 + $0xa0] sm:$0xff]  ;;  %v57_v29 = vld [vmem:[%s2039_s1 + $0xc8] sm:$0xff]  ;;  %vm266_vm1 = vcmask 64512   ;;  %s1292_s25 = sshll.u32 %s2046_s8, 4  ;;  %s1293_s25 = int_to_ptr.hbm [resolvable:$true] %s1292_s25 }
  0x14   :  { %v61_v30 = vld [vmem:[%s2039_s1 + $0xe8] sm:$0xff]  ;;  %198 = vmatpush.msra.mxu0 %v48_v24  ;;  %217 = vmatpush.msra.mxu1 %v53_v25  ;;  %v56_v32 = vld [vmem:[%s2039_s1 + $0xc0] sm:$0xff]  ;;  %s1462_s26 = smov 8  }
  0x15   :  { %236 = vmatpush.msra.mxu2 %v58_v26  ;;  %256 = vmatpush.msra.mxu3 %v62_v27  ;;  %v1614_v31 = vld [vmem:[%s2038_s0 + $0x8] sm:$0xff]  ;;  %v60_v33 = vld [vmem:[%s2039_s1 + $0xe0] sm:$0xff]  ;;  %s1457_s1 = smov 120  }
  0x16   :  { %1308 = vmatmul.msk.f32.vlgmr.msra.gmra.mxu0 %vm96_vm0, %v1614_v31  ;;  %218 = vmatpush.msra.mxu1 %v52_v28  ;;  %v1374_v34 = vld [vmem:[%s2040_s2] ss:$0 sm:$0xff]  ;;  %v1375_v38 = vld [vmem:[%s2040_s2 + $0x1] ss:$0 sm:$0xff]  ;;  %v1376_v39 = vld [vmem:[%s2040_s2 + $0x2] ss:$0 sm:$0xff] }
  0x17   :  { %237 = vmatpush.msra.mxu2 %v57_v29  ;;  %257 = vmatpush.msra.mxu3 %v61_v30  ;;  %v1377_v44 = vld [vmem:[%s2040_s2 + $0x3] ss:$0 sm:$0xff]  ;;  %v1378_v45 = vld [vmem:[%s2040_s2 + $0x6] ss:$0 sm:$0xff]  ;;  %v1380_v49 = vld [vmem:[%s2040_s2 + $0x4] ss:$0 sm:$0xff] }
  0x18   :  { %1309 = vmatmul.msk.f32.vlgmr.msra.gmra.mxu1 %vm96_vm0, %v1614_v31  ;;  %v1379_v51 = vld [vmem:[%s2040_s2 + $0x7] ss:$0 sm:$0xff]  ;;  %v1381_v55 = vld [vmem:[%s2040_s2 + $0x5] ss:$0 sm:$0xff]  ;;  %s1458_s2 = smov 112  }
  0x19   :  { %238 = vmatpush.msra.mxu2 %v56_v32  ;;  %258 = vmatpush.msra.mxu3 %v60_v33 }
  0x1a   :  { %1310 = vmatmul.msk.f32.vlgmr.msra.gmra.mxu2 %vm96_vm0, %v1614_v31  ;;  %1311 = vmatmul.msk.f32.vlgmr.msra.gmra.mxu3 %vm96_vm0, %v1614_v31 }
  0x8c   :  { %v117_v35 = vpop.f32.mrf.mxu3 }
  0x8d   :  { %v137_v36 = vpop.f32.mrf.mxu2  ;;  %v1633_v37 = vadd.f32 %v1374_v34, %v117_v35 }
  0x8e   :  { %v1642_v41 = vadd.f32 %v1375_v38, %v137_v36 }
  0x8f   :  { %264 = vrot.lane.b32.xlu2 %v1633_v37, %s1457_s1 }
  0x93   :  { %v200_v50 = vpop.f32.mrf.mxu0 }
  0x94   :  { %v177_v43 = vpop.f32.mrf.mxu3  ;;  %v1666_v53 = vadd.f32 %v1380_v49, %v200_v50 }
  0x95   :  { %v157_v40 = vpop.f32.mrf.mxu2  ;;  %v1654_v47 = vadd.f32 %v1377_v44, %v177_v43  ;;  %v220_v56 = vpop.f32.mrf.mxu1 }
  0x96   :  { %v1644_v42 = vadd.f32 %v1376_v39, %v157_v40  ;;  %v1675_v57 = vadd.f32 %v1381_v55, %v220_v56 }
  0x97   :  { %292 = vrot.lane.b32.xlu2 %v1642_v41, %s1457_s1 }
  0x98   :  { %319 = vrot.lane.b32.xlu0 %v1644_v42, %s1457_s1 }
  0x9d   :  { %v240_v46 = vpop.f32.mrf.mxu2  ;;  %v260_v52 = vpop.f32.mrf.mxu3 }
  0x9e   :  { %v1656_v48 = vadd.f32 %v1378_v45, %v240_v46  ;;  %v1668_v54 = vadd.f32 %v1379_v51, %v260_v52 }
  0xa0   :  { %427 = vrot.lane.b32.xlu1 %v1656_v48, %s1457_s1  ;;  %346 = vrot.lane.b32.xlu0 %v1654_v47, %s1457_s1 }
  0xa8   :  { %454 = vrot.lane.b32.xlu1 %v1668_v54, %s1457_s1  ;;  %373 = vrot.lane.b32.xlu0 %v1666_v53, %s1457_s1 }
  0xb0   :  { %400 = vrot.lane.b32.xlu1 %v1675_v57, %s1457_s1 }
  0xe9   :  { %v265_v58 = vpop.permute.xlu2 %264 }
  0xea   :  { %1312 = vmatpush.xpose.msk.msrb.mxu0 %vm266_vm1, %v265_v58 }
  0xed   :  { %1313 = vmatmul.msk.f32.vlgmr.msrb.gmra.mxu0 %vm266_vm1, %v1633_v37 }
  0xf1   :  { %v293_v59 = vpop.permute.xlu2 %292 }
  0xf2   :  { %1314 = vmatpush.xpose.msk.msrb.mxu1 %vm266_vm1, %v293_v59 }
  0xf5   :  { %1315 = vmatmul.msk.f32.vlgmr.msrb.gmra.mxu1 %vm266_vm1, %v1642_v41 }
 0x10a   :  { %v320_v60 = vpop.permute.xlu0 %319 }
 0x10b   :  { %1316 = vmatpush.xpose.msk.msrb.mxu2 %vm266_vm1, %v320_v60 }
 0x10e   :  { %1317 = vmatmul.msk.f32.vlgmr.msrb.gmra.mxu2 %vm266_vm1, %v1644_v42 }
 0x112   :  { %v428_v61 = vpop.permute.xlu1 %427  ;;  %v347_v62 = vpop.permute.xlu0 %346 }
 0x113   :  { %1318 = vmatpush.xpose.msk.msrb.mxu3 %vm266_vm1, %v347_v62  ;;  %1324 = vmatpush.xpose.msk.msra.mxu2 %vm266_vm1, %v428_v61 }
 0x116   :  { %1319 = vmatmul.msk.f32.vlgmr.msrb.gmra.mxu3 %vm266_vm1, %v1654_v47  ;;  %1325 = vmatmul.msk.f32.vlgmr.msra.gmra.mxu2 %vm266_vm1, %v1656_v48 }
 0x11a   :  { %v455_v63 = vpop.permute.xlu1 %454  ;;  %v374_v0 = vpop.permute.xlu0 %373 }
 0x11b   :  { %1320 = vmatpush.xpose.msk.msra.mxu0 %vm266_vm1, %v374_v0  ;;  %1326 = vmatpush.xpose.msk.msra.mxu3 %vm266_vm1, %v455_v63 }
 0x11e   :  { %1321 = vmatmul.msk.f32.vlgmr.msra.gmra.mxu0 %vm266_vm1, %v1666_v53  ;;  %1327 = vmatmul.msk.f32.vlgmr.msra.gmra.mxu3 %vm266_vm1, %v1668_v54 }
 0x122   :  { %v401_v1 = vpop.permute.xlu1 %400 }
 0x123   :  { %1322 = vmatpush.xpose.msk.msra.mxu1 %vm266_vm1, %v401_v1 }
 0x126   :  { %1323 = vmatmul.msk.f32.vlgmr.msra.gmra.mxu1 %vm266_vm1, %v1675_v57 }
 0x16a   :  { %v288_v2 = vpop.f32.mrf.mxu0 }
 0x16b   :  { %v480_v3 = vsel %vm266_vm1, %v288_v2, -inf }
 0x16c   :  { %481 = vmax.xlane.f32.xlu2 %v480_v3 }
 0x172   :  { %v315_v6 = vpop.f32.mrf.mxu1 }
 0x173   :  { %v483_v12 = vsel %vm266_vm1, %v315_v6, -inf }
 0x191   :  { %v342_v4 = vpop.f32.mrf.mxu2 }
 0x192   :  { %v486_v5 = vsel %vm266_vm1, %v342_v4, -inf }
 0x193   :  { %487 = vmax.xlane.f32.xlu2 %v486_v5  ;;  %v1359_v5 = vpack.i.bf16 %v1633_v37, %v1656_v48 }
 0x199   :  { %v369_v7 = vpop.f32.mrf.mxu3  ;;  %v450_v9 = vpop.f32.mrf.mxu2 }
 0x19a   :  { %v498_v10 = vsel %vm266_vm1, %v450_v9, -inf  ;;  %v489_v11 = vsel %vm266_vm1, %v369_v7, -inf }
 0x19b   :  { %499 = vmax.xlane.f32.xlu1 %v498_v10  ;;  %490 = vmax.xlane.f32.xlu0 %v489_v11  ;;  %v396_v13 = vpop.f32.mrf.mxu0 }
 0x19c   :  { %484 = vmax.xlane.f32.xlu2 %v483_v12  ;;  %v492_v16 = vsel %vm266_vm1, %v396_v13, -inf }
 0x1a1   :  { %v477_v14 = vpop.f32.mrf.mxu3 }
 0x1a2   :  { %v501_v15 = vsel %vm266_vm1, %v477_v14, -inf }
 0x1a3   :  { %502 = vmax.xlane.f32.xlu0 %v501_v15  ;;  %493 = vmax.xlane.f32.xlu1 %v492_v16  ;;  %v423_v17 = vpop.f32.mrf.mxu1 }
 0x1a4   :  { %v495_v18 = vsel %vm266_vm1, %v423_v17, -inf }
 0x1a5   :  { %496 = vmax.xlane.f32.xlu2 %v495_v18 }
 0x1df   :  { %v482_v19 = vpop.xlane.xlu2 %481 }
 0x1e0   :  { %v504_v20 = vsub.f32 %v288_v2, %v482_v19 }
 0x1e2   :  { %v512_v21 = vmul.f32 1.442695, %v504_v20 }
 0x1e4   :  { %1389 = vpow2.f32 %v512_v21 }
 0x1ea   :  { %v1710_v22 = vpop.eup %1389 }
 0x1eb   :  { %v528_v23 = vsel %vm266_vm1, %v1710_v22, 0.0 }
 0x1ec   :  { %529 = vadd.xlane.f32.xlu0 %v528_v23 }
 0x206   :  { %v488_v24 = vpop.xlane.xlu2 %487 }
 0x207   :  { %v506_v45 = vsub.f32 %v342_v4, %v488_v24  ;;  %v1354_v4 = vpack.i.bf16 %v1654_v47, %v1644_v42 }
 0x209   :  { %v516_v55 = vmul.f32 1.442695, %v506_v45 }
 0x20e   :  { %v500_v25 = vpop.xlane.xlu1 %499  ;;  %v491_v26 = vpop.xlane.xlu0 %490 }
 0x20f   :  { %v510_v27 = vsub.f32 %v450_v9, %v500_v25  ;;  %v485_v28 = vpop.xlane.xlu2 %484  ;;  %v507_v50 = vsub.f32 %v369_v7, %v491_v26  ;;  %v1369_v7 = vpack.i.bf16 %v1675_v57, %v1666_v53 }
 0x210   :  { %v505_v29 = vsub.f32 %v315_v6, %v485_v28  ;;  %v1364_v6 = vpack.i.bf16 %v1668_v54, %v1642_v41 }
 0x211   :  { %v524_v30 = vmul.f32 1.442695, %v510_v27  ;;  %v518_v56 = vmul.f32 1.442695, %v507_v50 }
 0x212   :  { %v514_v32 = vmul.f32 1.442695, %v505_v29 }
 0x213   :  { %1391 = vpow2.f32 %v524_v30 }
 0x214   :  { %1393 = vpow2.f32 %v514_v32 }
 0x216   :  { %v503_v33 = vpop.xlane.xlu0 %502  ;;  %v494_v34 = vpop.xlane.xlu1 %493 }
 0x217   :  { %v511_v35 = vsub.f32 %v477_v14, %v503_v33  ;;  %v508_v36 = vsub.f32 %v396_v13, %v494_v34 }
 0x218   :  { %v497_v38 = vpop.xlane.xlu2 %496 }
 0x219   :  { %v1714_v39 = vpop.eup %1391  ;;  %v526_v40 = vmul.f32 1.442695, %v511_v35  ;;  %v520_v43 = vmul.f32 1.442695, %v508_v36  ;;  %v509_v44 = vsub.f32 %v423_v17, %v497_v38 }
 0x21a   :  { %v546_v46 = vsel %vm266_vm1, %v1714_v39, 0.0  ;;  %v1718_v49 = vpop.eup %1393 }
 0x21b   :  { %1395 = vpow2.f32 %v526_v40  ;;  %v522_v51 = vmul.f32 1.442695, %v509_v44  ;;  %547 = vadd.xlane.f32.xlu2 %v546_v46  ;;  %v531_v52 = vsel %vm266_vm1, %v1718_v49, 0.0 }
 0x21c   :  { %1397 = vpow2.f32 %v520_v43  ;;  %532 = vadd.xlane.f32.xlu1 %v531_v52 }
 0x21d   :  { %1399 = vpow2.f32 %v522_v51 }
 0x21e   :  { %1401 = vpow2.f32 %v516_v55 }
 0x21f   :  { %1403 = vpow2.f32 %v518_v56 }
 0x221   :  { %v1722_v58 = vpop.eup %1395 }
 0x222   :  { %v1724_v59 = vpop.eup %1397  ;;  %v549_v60 = vsel %vm266_vm1, %v1722_v58, 0.0 }
 0x223   :  { %v1728_v61 = vpop.eup %1399  ;;  %550 = vadd.xlane.f32.xlu2 %v549_v60  ;;  %v540_v62 = vsel %vm266_vm1, %v1724_v59, 0.0 }
 0x224   :  { %541 = vadd.xlane.f32.xlu0 %v540_v62  ;;  %v543_v63 = vsel %vm266_vm1, %v1728_v61, 0.0  ;;  %v1734_v0 = vpop.eup %1401 }
 0x225   :  { %544 = vadd.xlane.f32.xlu1 %v543_v63  ;;  %v1736_v1 = vpop.eup %1403  ;;  %v534_v2 = vsel %vm266_vm1, %v1734_v0, 0.0 }
 0x226   :  { %v537_v3 = vsel %vm266_vm1, %v1736_v1, 0.0 }
 0x22c   :  { %535 = vadd.xlane.f32.xlu0 %v534_v2 }
 0x22d   :  { %538 = vadd.xlane.f32.xlu1 %v537_v3 }
 0x23b   :  { %1355 = vrot.lane.b32.xlu2 %v1354_v4, %s1458_s2 }
 0x240   :  { %1360 = vrot.lane.b32.xlu0 %v1359_v5, %s1458_s2 }
 0x246   :  { %1365 = vrot.lane.b32.xlu1 %v1364_v6, %s1458_s2 }
 0x248   :  { %1370 = vrot.lane.b32.xlu0 %v1369_v7, %s1458_s2  ;;  %s1460_s2 = smov [#allocation2]  }
 0x249   :  { %s1290_s22 = sshll.u32 %s1460_s2, 4  ;;  %s1291_s22 = int_to_ptr.vmem [resolvable:$true] %s1290_s22 }
 0x25f   :  { %v530_v9 = vpop.xlane.xlu0 %529 }
 0x260   :  { %1405 = vrcp.f32 %v530_v9  ;;  %v563_v13 = vand.u32 2147483648, %v530_v9  ;;  %vm557_vm3 = vweird.f32 %v530_v9  ;;  %v561_v14 = vand.u32 2147483647, %v530_v9 }
 0x262   :  { %v564_v23 = vor.u32 1.1754944e-38, %v563_v13  ;;  %vm562_vm5 = vcmp.eq.f32.partialorder %v561_v14, 8.507059e+37 }
 0x266   :  { %v1406_v10 = vpop.eup %1405 }
 0x267   :  { %v553_v42 = vmul.f32 %v1406_v10, %v530_v9  ;;  %vm558_vm2 = vweird.f32 %v1406_v10 }
 0x268   :  { %vm559_vm4 = vmor %vm557_vm3, %vm558_vm2 }
 0x269   :  { %v554_v12 = vsub.f32 1.0, %v553_v42  ;;  %v886_v42 = vld [vmem:[%s2041_s3 + $0x30] sm:$0xff] }
 0x26b   :  { %v555_v41 = vmul.f32 %v1406_v10, %v554_v12 }
 0x26d   :  { %v556_v57 = vadd.f32 %v1406_v10, %v555_v41 }
 0x26f   :  { %v560_v19 = vsel %vm559_vm4, %v1406_v10, %v556_v57 }
 0x270   :  { %v565_v27 = vsel %vm562_vm5, %v564_v23, %v560_v19 }
 0x271   :  { %v1790_v36 = vmul.f32 %v1710_v22, %v565_v27 }
 0x28e   :  { %v1750_v11 = vpop.xlane.xlu2 %547 }
 0x28f   :  { %v1752_v47 = vpop.xlane.xlu1 %532  ;;  %1407 = vrcp.f32 %v1750_v11  ;;  %v653_v30 = vand.u32 2147483648, %v1750_v11  ;;  %vm647_vm6 = vweird.f32 %v1750_v11  ;;  %v651_v43 = vand.u32 2147483647, %v1750_v11 }
 0x290   :  { %1409 = vrcp.f32 %v1752_v47  ;;  %v576_v38 = vand.u32 2147483647, %v1752_v47  ;;  %v578_v46 = vand.u32 2147483648, %v1752_v47  ;;  %vm572_vm8 = vweird.f32 %v1752_v47 }
 0x291   :  { %v1800_v50 = vor.u32 1.1754944e-38, %v653_v30  ;;  %vm1812_vm12 = vcmp.eq.f32.partialorder %v651_v43, 8.507059e+37 }
 0x295   :  { %v1763_v53 = vpop.eup %1407 }
 0x296   :  { %v1755_v37 = vpop.xlane.xlu2 %550  ;;  %v1766_v15 = vpop.eup %1409  ;;  %v643_v16 = vmul.f32 %v1763_v53, %v1750_v11  ;;  %vm648_vm7 = vweird.f32 %v1763_v53 }
 0x297   :  { %v1757_v48 = vpop.xlane.xlu0 %541  ;;  %1411 = vrcp.f32 %v1755_v37  ;;  %v568_v25 = vmul.f32 %v1766_v15, %v1752_v47  ;;  %v666_v51 = vand.u32 2147483647, %v1755_v37  ;;  %v668_v56 = vand.u32 2147483648, %v1755_v37  ;;  %vm1824_vm14 = vmor %vm647_vm6, %vm648_vm7 }
 0x298   :  { %v1759_v54 = vpop.xlane.xlu1 %544  ;;  %1413 = vrcp.f32 %v1757_v48  ;;  %v644_v28 = vsub.f32 1.0, %v643_v16  ;;  %vm573_vm9 = vweird.f32 %v1766_v15  ;;  %vm662_vm10 = vweird.f32 %v1755_v37 }
 0x299   :  { %v569_v35 = vsub.f32 1.0, %v568_v25  ;;  %v621_v7 = vand.u32 2147483647, %v1757_v48 }
 0x29a   :  { %v645_v40 = vmul.f32 %v1763_v53, %v644_v28 }
 0x29b   :  { %v570_v62 = vmul.f32 %v1766_v15, %v569_v35 }
 0x29c   :  { %v646_v3 = vadd.f32 %v1763_v53, %v645_v40 }
 0x29d   :  { %v1775_v21 = vpop.eup %1411 }
 0x29e   :  { %v1356_v18 = vpop.permute.xlu2 %1355  ;;  %v1777_v24 = vpop.eup %1413  ;;  %v658_v33 = vmul.f32 %v1775_v21, %v1755_v37  ;;  %v650_v11 = vsel %vm1824_vm14, %v1763_v53, %v646_v3  ;;  %vm663_vm6 = vweird.f32 %v1775_v21  ;;  %vm617_vm14 = vweird.f32 %v1757_v48 }
 0x29f   :  { %v1770_v17 = vpop.xlane.xlu0 %535  ;;  %v1358_v26 = vunpack.i.h.bf16 %v1356_v18  ;;  %v1357_v29 = vunpack.i.l.bf16 %v1356_v18  ;;  %v613_v32 = vmul.f32 %v1777_v24, %v1757_v48  ;;  %v571_v18 = vadd.f32 %v1766_v15, %v570_v62 }
 0x2a0   :  { %1415 = vrcp.f32 %v1770_v17  ;;  %v1773_v20 = vpop.xlane.xlu1 %538  ;;  %v659_v55 = vsub.f32 1.0, %v658_v33  ;;  %v593_v63 = vand.u32 2147483648, %v1770_v17  ;;  %v591_v5 = vand.u32 2147483647, %v1770_v17 }
 0x2a1   :  { %1417 = vrcp.f32 %v1759_v54  ;;  %771 = vmatpush.msrb.mxu3 %v1358_v26  ;;  %745 = vmatpush.msrb.mxu2 %v1357_v29  ;;  %v614_v52 = vsub.f32 1.0, %v613_v32  ;;  %vm587_vm13 = vweird.f32 %v1770_v17  ;;  %v608_v13 = vand.u32 2147483648, %v1773_v20 }
 0x2a2   :  { %1419 = vrcp.f32 %v1773_v20  ;;  %v660_v41 = vmul.f32 %v1775_v21, %v659_v55  ;;  %v594_v14 = vor.u32 1.1754944e-38, %v593_v63  ;;  %vm592_vm3 = vcmp.eq.f32.partialorder %v591_v5, 8.507059e+37 }
 0x2a3   :  { %v615_v12 = vmul.f32 %v1777_v24, %v614_v52  ;;  %vm602_vm4 = vweird.f32 %v1773_v20  ;;  %vm618_vm5 = vweird.f32 %v1777_v24  ;;  %v609_v27 = vor.u32 1.1754944e-38, %v608_v13 }
 0x2a4   :  { %v661_v30 = vadd.f32 %v1775_v21, %v660_v41  ;;  %v623_v33 = vand.u32 2147483648, %v1757_v48  ;;  %v579_v52 = vor.u32 1.1754944e-38, %v578_v46  ;;  %v885_v41 = vld [vmem:[%s2041_s3 + $0x28] sm:$0xff] }
 0x2a5   :  { %v616_v29 = vadd.f32 %v1777_v24, %v615_v12  ;;  %v887_v12 = vld [vmem:[%s2041_s3 + $0x38] sm:$0xff] }
 0x2a6   :  { %v1416_v34 = vpop.eup %1415  ;;  %v624_v47 = vor.u32 1.1754944e-38, %v623_v33  ;;  %v1382_v33 = vld [vmem:[%s2045_s7] ss:$0 sm:$0xff] }
 0x2a7   :  { %v583_v44 = vmul.f32 %v1416_v34, %v1770_v17  ;;  %v1796_v45 = vpop.eup %1417  ;;  %vm588_vm11 = vweird.f32 %v1416_v34  ;;  %v606_v17 = vand.u32 2147483647, %v1773_v20 }
 0x2a8   :  { %v1420_v22 = vpop.eup %1419  ;;  %v628_v9 = vmul.f32 %v1796_v45, %v1759_v54  ;;  %vm589_vm15 = vmor %vm587_vm13, %vm588_vm11 }
 0x2a9   :  { %v584_v60 = vsub.f32 1.0, %v583_v44  ;;  %v598_v2 = vmul.f32 %v1420_v22, %v1773_v20  ;;  %vm603_vm2 = vweird.f32 %v1420_v22  ;;  %vm607_vm11 = vcmp.eq.f32.partialorder %v606_v17, 8.507059e+37  ;;  %vm1846_vm13 = vmor %vm572_vm8, %vm573_vm9 }
 0x2aa   :  { %v629_v23 = vsub.f32 1.0, %v628_v9  ;;  %vm604_vm7 = vmor %vm602_vm4, %vm603_vm2  ;;  %v575_v40 = vsel %vm1846_vm13, %v1766_v15, %v571_v18  ;;  %v655_v15 = vsel %vm1812_vm12, %v1800_v50, %v650_v11  ;;  %vm667_vm12 = vcmp.eq.f32.partialorder %v666_v51, 8.507059e+37 }
 0x2ab   :  { %v585_v4 = vmul.f32 %v1416_v34, %v584_v60  ;;  %v599_v10 = vsub.f32 1.0, %v598_v2  ;;  %vm1860_vm8 = vmor %vm662_vm10, %vm663_vm6  ;;  %vm577_vm10 = vcmp.eq.f32.partialorder %v576_v38, 8.507059e+37  ;;  %v669_v38 = vor.u32 1.1754944e-38, %v668_v56 }
 0x2ac   :  { %v630_v44 = vmul.f32 %v1796_v45, %v629_v23  ;;  %vm1873_vm9 = vmor %vm617_vm14, %vm618_vm5  ;;  %v665_v46 = vsel %vm1860_vm8, %v1775_v21, %v661_v30  ;;  %v580_v50 = vsel %vm577_vm10, %v579_v52, %v575_v40  ;;  %vm633_vm2 = vweird.f32 %v1796_v45 }
 0x2ad   :  { %v586_v57 = vadd.f32 %v1416_v34, %v585_v4  ;;  %v600_v16 = vmul.f32 %v1420_v22, %v599_v10  ;;  %v638_v21 = vand.u32 2147483648, %v1759_v54  ;;  %v656_v51 = vmul.f32 %v1714_v39, %v655_v15  ;;  %v884_v10 = vld [vmem:[%s2041_s3 + $0x20] sm:$0xff] }
 0x2ae   :  { %v670_v62 = vsel %vm667_vm12, %v669_v38, %v665_v46  ;;  %v581_v37 = vmul.f32 %v1718_v49, %v580_v50 }
 0x2af   :  { %v590_v19 = vsel %vm589_vm15, %v1416_v34, %v586_v57  ;;  %v601_v26 = vadd.f32 %v1420_v22, %v600_v16  ;;  %vm622_vm15 = vcmp.eq.f32.partialorder %v621_v7, 8.507059e+37  ;;  %v639_v6 = vor.u32 1.1754944e-38, %v638_v21 }
 0x2b0   :  { %v595_v25 = vsel %vm592_vm3, %v594_v14, %v590_v19  ;;  %vm632_vm3 = vweird.f32 %v1759_v54 }
 0x2b1   :  { %v596_v28 = vmul.f32 %v1734_v0, %v595_v25  ;;  %v605_v53 = vsel %vm604_vm7, %v1420_v22, %v601_v26  ;;  %vm1899_vm4 = vmor %vm632_vm3, %vm633_vm2 }
 0x2b2   :  { %v1361_v32 = vpop.permute.xlu0 %1360  ;;  %v610_v34 = vsel %vm607_vm11, %v609_v27, %v605_v53 }
 0x2b3   :  { %v1363_v35 = vunpack.i.h.bf16 %v1361_v32  ;;  %v1362_v0 = vunpack.i.l.bf16 %v1361_v32  ;;  %1330 = vmatmul.msk.f32.vlgmr.msrb.gmra.mxu2 %vm266_vm1, %v596_v28  ;;  %v611_v22 = vmul.f32 %v1736_v1, %v610_v34  ;;  %v620_v1 = vsel %vm1873_vm9, %v1777_v24, %v616_v29 }
 0x2b4   :  { %v631_v24 = vadd.f32 %v1796_v45, %v630_v44  ;;  %v625_v60 = vsel %vm622_vm15, %v624_v47, %v620_v1  ;;  %vm1200_vm9 = vcmask 523264  }
 0x2b5   :  { %693 = vmatpush.msrb.mxu0 %v1363_v35  ;;  %849 = vmatpush.msra.mxu2 %v1362_v0  ;;  %v626_v49 = vmul.f32 %v1724_v59, %v625_v60  ;;  %v883_v59 = vld [vmem:[%s2041_s3 + $0x18] sm:$0xff] }
 0x2b6   :  { %1331 = vmatmul.msk.f32.vlgmr.msrb.gmra.mxu3 %vm266_vm1, %v611_v22  ;;  %1328 = vmatmul.msk.f32.vlgmr.msrb.gmra.mxu0 %vm266_vm1, %v1790_v36  ;;  %v636_v36 = vand.u32 2147483647, %v1759_v54  ;;  %v635_v39 = vsel %vm1899_vm4, %v1796_v45, %v631_v24  ;;  %v671_v54 = vmul.f32 %v1722_v58, %v670_v62  ;;  %v880_v45 = vld [vmem:[%s2041_s3] sm:$0xff]  ;;  %v882_v58 = vld [vmem:[%s2041_s3 + $0x10] sm:$0xff] }
 0x2b7   :  { %952 = vmatpush.msrb.mxu2 %v882_v58  ;;  %v1151_v58 = vld [vmem:[%s2042_s4] sm:$0xff] }
 0x2b8   :  { %v1366_v55 = vpop.permute.xlu1 %1365  ;;  %vm637_vm5 = vcmp.eq.f32.partialorder %v636_v36, 8.507059e+37 }
 0x2b9   :  { %v1368_v63 = vunpack.i.h.bf16 %v1366_v55  ;;  %v1367_v2 = vunpack.i.l.bf16 %v1366_v55  ;;  %v640_v7 = vsel %vm637_vm5, %v639_v6, %v635_v39 }
 0x2ba   :  { %v1371_v3 = vpop.permute.xlu0 %1370  ;;  %v641_v9 = vmul.f32 %v1728_v61, %v640_v7  ;;  %v881_v61 = vld [vmem:[%s2041_s3 + $0x8] sm:$0xff]  ;;  %v1154_v7 = vld [vmem:[%s2042_s4 + $0x18] sm:$0xff] }
 0x2bb   :  { %v1373_v4 = vunpack.i.h.bf16 %v1371_v3  ;;  %v1372_v5 = vunpack.i.l.bf16 %v1371_v3  ;;  %1334 = vmatmul.msk.f32.vlgmr.msra.gmra.mxu2 %vm266_vm1, %v656_v51  ;;  %719 = vmatpush.msrb.mxu1 %v1367_v2  ;;  %v1459_v51 = vmov 32.0  }
 0x2bc   :  { %875 = vmatpush.msra.mxu3 %v1368_v63  ;;  %1329 = vmatmul.msk.f32.vlgmr.msrb.gmra.mxu1 %vm266_vm1, %v581_v37  ;;  %1421 = vrcp.f32 %v1459_v51  ;;  %v1386_v51 = vld [vmem:[%s2045_s7 + $0x1] ss:$0 sm:$0xff] }
 0x2bd   :  { %797 = vmatpush.msra.mxu0 %v1372_v5  ;;  %823 = vmatpush.msra.mxu1 %v1373_v4 }
 0x2be   :  { %1335 = vmatmul.msk.f32.vlgmr.msra.gmra.mxu3 %vm266_vm1, %v671_v54  ;;  %1332 = vmatmul.msk.f32.vlgmr.msra.gmra.mxu0 %vm266_vm1, %v626_v49 }
 0x2bf   :  { %906 = vmatpush.msrb.mxu0 %v880_v45  ;;  %975 = vmatpush.msrb.mxu3 %v883_v59  ;;  %v1152_v45 = vld [vmem:[%s2042_s4 + $0x8] sm:$0xff] }
 0x2c0   :  { %929 = vmatpush.msrb.mxu1 %v881_v61  ;;  %1044 = vmatpush.msra.mxu2 %v886_v42  ;;  %v1197_v42 = vld [vmem:[%s2044_s6 + $0x38] sm:$0xff] }
 0x2c1   :  { %998 = vmatpush.msra.mxu0 %v884_v10  ;;  %1067 = vmatpush.msra.mxu3 %v887_v12  ;;  %v1196_v12 = vld [vmem:[%s2044_s6 + $0x30] sm:$0xff] }
 0x2c2   :  { %v1422_v60 = vpop.eup %1421 }
 0x2c3   :  { %v1101_v62 = vmul.f32 32.0, %v1422_v60 }
 0x2c4   :  { %1333 = vmatmul.msk.f32.vlgmr.msra.gmra.mxu1 %vm266_vm1, %v641_v9  ;;  %v1153_v9 = vld [vmem:[%s2042_s4 + $0x10] sm:$0xff] }
 0x2c5   :  { %1021 = vmatpush.msra.mxu1 %v885_v41  ;;  %v1102_v63 = vsub.f32 1.0, %v1101_v62  ;;  %v1195_v41 = vld [vmem:[%s2044_s6 + $0x28] sm:$0xff] }
 0x333   :  { %v695_v57 = vpop.f32.mrf.mxu0 }
 0x334   :  { %1336 = vmatmul.msk.f32.vlgmr.msrb.gmra.mxu0 %vm266_vm1, %v695_v57 }
 0x335   :  { %1177 = vmatpush.msrb.mxu0 %v1154_v7 }
 0x336   :  { %v747_v13 = vpop.f32.mrf.mxu2 }
 0x337   :  { %1338 = vmatmul.msk.f32.vlgmr.msrb.gmra.mxu2 %vm266_vm1, %v747_v13  ;;  %1178 = vmatpush.msrb.mxu0 %v1153_v9 }
 0x339   :  { %v773_v14 = vpop.f32.mrf.mxu3  ;;  %v721_v16 = vpop.f32.mrf.mxu1  ;;  %1179 = vmatpush.msrb.mxu0 %v1152_v45 }
 0x33a   :  { %1339 = vmatmul.msk.f32.vlgmr.msrb.gmra.mxu3 %vm266_vm1, %v773_v14  ;;  %1337 = vmatmul.msk.f32.vlgmr.msrb.gmra.mxu1 %vm266_vm1, %v721_v16  ;;  %v1194_v14 = vld [vmem:[%s2044_s6 + $0x20] sm:$0xff] }
 0x33b   :  { %v799_v17 = vpop.f32.mrf.mxu0  ;;  %1180 = vmatpush.msrb.mxu0 %v1151_v58  ;;  %1215 = vmatpush.msrb.mxu1 %v1197_v42 }
 0x33c   :  { %1340 = vmatmul.msk.f32.vlgmr.msra.gmra.mxu0 %vm266_vm1, %v799_v17 }
 0x33d   :  { %1216 = vmatpush.msrb.mxu1 %v1196_v12 }
 0x33e   :  { %v851_v18 = vpop.f32.mrf.mxu2 }
 0x33f   :  { %1342 = vmatmul.msk.f32.vlgmr.msra.gmra.mxu2 %vm266_vm1, %v851_v18  ;;  %1217 = vmatpush.msrb.mxu1 %v1195_v41  ;;  %v1193_v18 = vld [vmem:[%s2044_s6 + $0x18] sm:$0xff] }
 0x341   :  { %v877_v11 = vpop.f32.mrf.mxu3  ;;  %v825_v19 = vpop.f32.mrf.mxu1  ;;  %1218 = vmatpush.msrb.mxu1 %v1194_v14 }
 0x342   :  { %1343 = vmatmul.msk.f32.vlgmr.msra.gmra.mxu3 %vm266_vm1, %v877_v11  ;;  %1341 = vmatmul.msk.f32.vlgmr.msra.gmra.mxu1 %vm266_vm1, %v825_v19  ;;  %vm1105_vm1 = vweird.f32 %v1422_v60 }
 0x343   :  { %1219 = vmatpush.msrb.mxu1 %v1193_v18 }
 0x3b1   :  { %v908_v23 = vpop.f32.mrf.mxu0 }
 0x3b2   :  { %v1072_v26 = vsel %vm96_vm0, %v908_v23, 0.0 }
 0x3b7   :  { %v931_v25 = vpop.f32.mrf.mxu1 }
 0x3b8   :  { %v1073_v27 = vsel %vm96_vm0, %v931_v25, 0.0 }
 0x3b9   :  { %v1074_v28 = vadd.f32 %v1073_v27, %v1072_v26  ;;  %v1000_v32 = vpop.f32.mrf.mxu0 }
 0x3ba   :  { %v954_v29 = vpop.f32.mrf.mxu2  ;;  %v1079_v40 = vsel %vm96_vm0, %v1000_v32, 0.0 }
 0x3bb   :  { %v1075_v30 = vsel %vm96_vm0, %v954_v29, 0.0  ;;  %v1383_v29 = vld [vmem:[%s2045_s7 + $0x2] ss:$0 sm:$0xff] }
 0x3bc   :  { %v1076_v53 = vadd.f32 %v1075_v30, %v1074_v28 }
 0x3bd   :  { %v977_v20 = vpop.f32.mrf.mxu3 }
 0x3be   :  { %v1077_v34 = vsel %vm96_vm0, %v977_v20, 0.0  ;;  %v1384_v20 = vld [vmem:[%s2045_s7 + $0x3] ss:$0 sm:$0xff] }
 0x3bf   :  { %v1078_v35 = vadd.f32 %v1077_v34, %v1076_v53  ;;  %v1023_v0 = vpop.f32.mrf.mxu1 }
 0x3c0   :  { %v1080_v43 = vsel %vm96_vm0, %v1023_v0, 0.0 }
 0x3c1   :  { %v1088_v44 = vadd.f32 %v1382_v33, %v1078_v35  ;;  %v1081_v22 = vadd.f32 %v1080_v43, %v1079_v40 }
 0x3c2   :  { %v1046_v52 = vpop.f32.mrf.mxu2 }
 0x3c3   :  { %v1082_v15 = vsel %vm96_vm0, %v1046_v52, 0.0  ;;  %v1090_v48 = vadd.f32 %v1088_v44, %v1535_v8  ;;  %v1103_v8 = vmul.f32 %v1422_v60, %v1102_v63 }
 0x3c4   :  { %v1083_v1 = vadd.f32 %v1082_v15, %v1081_v22  ;;  %v1192_v15 = vld [vmem:[%s2044_s6 + $0x10] sm:$0xff] }
 0x3c5   :  { %v1069_v46 = vpop.f32.mrf.mxu3  ;;  %v1094_v50 = vsel %vm96_vm0, %v1090_v48, 0.0  ;;  %v1104_v2 = vadd.f32 %v1422_v60, %v1103_v8  ;;  %1220 = vmatpush.msrb.mxu1 %v1192_v15 }
 0x3c6   :  { %v1084_v47 = vsel %vm96_vm0, %v1069_v46, 0.0  ;;  %1095 = vadd.xlane.f32.xlu2 %v1094_v50  ;;  %v1385_v46 = vld [vmem:[%s2043_s5] ss:$0 sm:$0xff] }
 0x3c7   :  { %v1085_v38 = vadd.f32 %v1084_v47, %v1083_v1  ;;  %v1961_v36 = vsel %vm1105_vm1, %v1422_v60, %v1104_v2  ;;  %v1190_v1 = vld [vmem:[%s2044_s6] sm:$0xff] }
 0x3c9   :  { %v1089_v24 = vadd.f32 %v1382_v33, %v1085_v38 }
 0x3cb   :  { %v1091_v21 = vadd.f32 %v1089_v24, %v1614_v31 }
 0x3cd   :  { %v1097_v55 = vsel %vm96_vm0, %v1091_v21, 0.0 }
 0x3ce   :  { %1098 = vadd.xlane.f32.xlu1 %v1097_v55 }
 0x439   :  { %v1096_v3 = vpop.xlane.xlu2 %1095 }
 0x43a   :  { %v1107_v37 = vmul.f32 %v1961_v36, %v1096_v3 }
 0x43c   :  { %v1109_v56 = vsub.f32 %v1090_v48, %v1107_v37  ;;  %v1191_v48 = vld [vmem:[%s2044_s6 + $0x8] sm:$0xff] }
 0x43d   :  { %1221 = vmatpush.msrb.mxu1 %v1191_v48 }
 0x43e   :  { %v1111_v4 = vmul.f32 %v1109_v56, %v1109_v56 }
 0x43f   :  { %1222 = vmatpush.msrb.mxu1 %v1190_v1 }
 0x440   :  { %v1113_v31 = vsel %vm96_vm0, %v1111_v4, 0.0 }
 0x441   :  { %1114 = vadd.xlane.f32.xlu0 %v1113_v31  ;;  %v1099_v5 = vpop.xlane.xlu1 %1098 }
 0x442   :  { %v1108_v39 = vmul.f32 %v1961_v36, %v1099_v5 }
 0x444   :  { %v1110_v54 = vsub.f32 %v1091_v21, %v1108_v39 }
 0x446   :  { %v1112_v49 = vmul.f32 %v1110_v54, %v1110_v54 }
 0x448   :  { %v1116_v6 = vsel %vm96_vm0, %v1112_v49, 0.0 }
 0x449   :  { %1117 = vadd.xlane.f32.xlu2 %v1116_v6 }
 0x4b4   :  { %v1115_v59 = vpop.xlane.xlu0 %1114 }
 0x4b5   :  { %v1119_v61 = vmul.f32 %v1115_v59, %v1961_v36 }
 0x4b7   :  { %v1121_v10 = vadd.f32 1e-05, %v1119_v61 }
 0x4b9   :  { %1423 = vrsqrt.f32 %v1121_v10  ;;  %vm1129_vm7 = vweird.f32 %v1121_v10 }
 0x4bc   :  { %v1118_v57 = vpop.xlane.xlu2 %1117 }
 0x4bd   :  { %v1120_v13 = vmul.f32 %v1118_v57, %v1961_v36 }
 0x4bf   :  { %v1424_v16 = vpop.eup %1423  ;;  %v1122_v17 = vadd.f32 1e-05, %v1120_v13 }
 0x4c0   :  { %v1124_v11 = vmul.f32 %v1424_v16, %v1121_v10  ;;  %vm1130_vm6 = vweird.f32 %v1424_v16 }
 0x4c1   :  { %1425 = vrsqrt.f32 %v1122_v17  ;;  %vm1131_vm11 = vmor %vm1129_vm7, %vm1130_vm6  ;;  %vm1139_vm14 = vweird.f32 %v1122_v17 }
 0x4c2   :  { %v1125_v19 = vmul.f32 %v1424_v16, %v1124_v11 }
 0x4c4   :  { %v1126_v23 = vmul.f32 0.5, %v1125_v19  ;;  %v1387_v19 = vld [vmem:[%s2045_s7 + $0x4] ss:$0 sm:$0xff] }
 0x4c6   :  { %v1127_v25 = vsub.f32 1.5, %v1126_v23 }
 0x4c7   :  { %v1426_v26 = vpop.eup %1425 }
 0x4c8   :  { %v1128_v27 = vmul.f32 %v1424_v16, %v1127_v25  ;;  %v1134_v28 = vmul.f32 %v1426_v26, %v1122_v17  ;;  %vm1140_vm13 = vweird.f32 %v1426_v26 }
 0x4c9   :  { %vm1141_vm8 = vmor %vm1139_vm14, %vm1140_vm13 }
 0x4ca   :  { %v1132_v30 = vsel %vm1131_vm11, %v1424_v16, %v1128_v27  ;;  %v1135_v53 = vmul.f32 %v1426_v26, %v1134_v28 }
 0x4cb   :  { %v1143_v32 = vmul.f32 %v1132_v30, %v1109_v56 }
 0x4cc   :  { %v1136_v33 = vmul.f32 0.5, %v1135_v53 }
 0x4cd   :  { %v1146_v34 = vmul.f32 %v1383_v29, %v1143_v32 }
 0x4ce   :  { %v1137_v35 = vsub.f32 1.5, %v1136_v33 }
 0x4cf   :  { %v1149_v0 = vadd.f32 %v1384_v20, %v1146_v34 }
 0x4d0   :  { %v1138_v40 = vmul.f32 %v1426_v26, %v1137_v35 }
 0x4d1   :  { %1344 = vmatmul.msk.f32.vlgmr.msrb.gmra.mxu0 %vm96_vm0, %v1149_v0 }
 0x4d2   :  { %v1142_v43 = vsel %vm1141_vm8, %v1426_v26, %v1138_v40  ;;  %v1388_v26 = vld [vmem:[%s2045_s7 + $0x5] ss:$0 sm:$0xff]  ;;  %s1461_s7 = smov 128  }
 0x4d3   :  { %v1144_v44 = vmul.f32 %v1142_v43, %v1110_v54 }
 0x4d5   :  { %v1147_v22 = vmul.f32 %v1383_v29, %v1144_v44 }
 0x4d7   :  { %v1150_v52 = vadd.f32 %v1384_v20, %v1147_v22 }
 0x4d9   :  { %1345 = vmatmul.msk.f32.gmra.mxu0 %vm96_vm0, %v1150_v52 }
 0x54e   :  { %v1182_v50 = vpop.f32.mrf.mxu0 }
 0x54f   :  { %v1183_v47 = vadd.f32 %v1385_v46, %v1182_v50 }
 0x551   :  { %v1188_v38 = vmax.f32 %v1183_v47, 0.0 }
 0x553   :  { %1346 = vmatmul.msk.f32.vlgmr.msrb.gmra.mxu1 %vm1200_vm9, %v1188_v38 }
 0x556   :  { %v1185_v24 = vpop.f32.mrf.mxu0 }
 0x557   :  { %v1186_v21 = vadd.f32 %v1385_v46, %v1185_v24 }
 0x559   :  { %v1189_v55 = vmax.f32 %v1186_v21, 0.0 }
 0x55b   :  { %1347 = vmatmul.msk.f32.gmra.mxu1 %vm1200_vm9, %v1189_v55 }
 0x5d0   :  { %v1224_v60 = vpop.f32.mrf.mxu1 }
 0x5d1   :  { %v1225_v62 = vadd.f32 %v1386_v51, %v1224_v60 }
 0x5d3   :  { %v1230_v63 = vadd.f32 %v1225_v62, %v1149_v0 }
 0x5d5   :  { %v1234_v8 = vsel %vm96_vm0, %v1230_v63, 0.0 }
 0x5d6   :  { %1235 = vadd.xlane.f32.xlu1 %v1234_v8 }
 0x5d8   :  { %v1227_v2 = vpop.f32.mrf.mxu1 }
 0x5d9   :  { %v1228_v3 = vadd.f32 %v1386_v51, %v1227_v2 }
 0x5db   :  { %v1231_v37 = vadd.f32 %v1228_v3, %v1150_v52 }
 0x5dd   :  { %v1237_v56 = vsel %vm96_vm0, %v1231_v37, 0.0 }
 0x5de   :  { %1238 = vadd.xlane.f32.xlu0 %v1237_v56 }
 0x649   :  { %v1236_v4 = vpop.xlane.xlu1 %1235 }
 0x64a   :  { %v1240_v31 = vmul.f32 %v1236_v4, %v1961_v36 }
 0x64c   :  { %v1242_v5 = vsub.f32 %v1230_v63, %v1240_v31 }
 0x64e   :  { %v1244_v39 = vmul.f32 %v1242_v5, %v1242_v5 }
 0x650   :  { %v1246_v54 = vsel %vm96_vm0, %v1244_v39, 0.0 }
 0x651   :  { %v1239_v49 = vpop.xlane.xlu0 %1238  ;;  %1247 = vadd.xlane.f32.xlu2 %v1246_v54 }
 0x652   :  { %v1241_v6 = vmul.f32 %v1239_v49, %v1961_v36 }
 0x654   :  { %v1243_v7 = vsub.f32 %v1231_v37, %v1241_v6 }
 0x656   :  { %v1245_v9 = vmul.f32 %v1243_v7, %v1243_v7 }
 0x658   :  { %v1249_v45 = vsel %vm96_vm0, %v1245_v9, 0.0 }
 0x659   :  { %1250 = vadd.xlane.f32.xlu1 %v1249_v45 }
 0x6c4   :  { %v1248_v58 = vpop.xlane.xlu2 %1247 }
 0x6c5   :  { %v1252_v59 = vmul.f32 %v1248_v58, %v1961_v36 }
 0x6c7   :  { %v1254_v61 = vadd.f32 1e-05, %v1252_v59 }
 0x6c9   :  { %1427 = vrsqrt.f32 %v1254_v61  ;;  %vm1262_vm12 = vweird.f32 %v1254_v61 }
 0x6cc   :  { %v1251_v10 = vpop.xlane.xlu1 %1250 }
 0x6cd   :  { %v1253_v42 = vmul.f32 %v1251_v10, %v1961_v36 }
 0x6cf   :  { %v1428_v12 = vpop.eup %1427  ;;  %v1255_v41 = vadd.f32 1e-05, %v1253_v42 }
 0x6d0   :  { %v1257_v57 = vmul.f32 %v1428_v12, %v1254_v61  ;;  %vm1263_vm10 = vweird.f32 %v1428_v12 }
 0x6d1   :  { %1429 = vrsqrt.f32 %v1255_v41  ;;  %vm1264_vm15 = vmor %vm1262_vm12, %vm1263_vm10  ;;  %vm1272_vm3 = vweird.f32 %v1255_v41 }
 0x6d2   :  { %v1258_v13 = vmul.f32 %v1428_v12, %v1257_v57 }
 0x6d4   :  { %v1259_v14 = vmul.f32 0.5, %v1258_v13 }
 0x6d6   :  { %v1260_v16 = vsub.f32 1.5, %v1259_v14 }
 0x6d7   :  { %v1430_v17 = vpop.eup %1429 }
 0x6d8   :  { %v1261_v18 = vmul.f32 %v1428_v12, %v1260_v16  ;;  %v1267_v11 = vmul.f32 %v1430_v17, %v1255_v41  ;;  %vm1273_vm2 = vweird.f32 %v1430_v17 }
 0x6d9   :  { %vm1274_vm4 = vmor %vm1272_vm3, %vm1273_vm2 }
 0x6da   :  { %v1265_v23 = vsel %vm1264_vm15, %v1428_v12, %v1261_v18  ;;  %v1268_v25 = vmul.f32 %v1430_v17, %v1267_v11 }
 0x6db   :  { %v1276_v36 = vmul.f32 %v1265_v23, %v1242_v5 }
 0x6dc   :  { %v1269_v27 = vmul.f32 0.5, %v1268_v25 }
 0x6dd   :  { %v1279_v28 = vmul.f32 %v1387_v19, %v1276_v36 }
 0x6de   :  { %v1270_v29 = vsub.f32 1.5, %v1269_v27 }
 0x6df   :  { %v1282_v30 = vadd.f32 %v1388_v26, %v1279_v28 }
 0x6e0   :  { %v1271_v53 = vmul.f32 %v1430_v17, %v1270_v29 }
 0x6e1   :  { %1284 = vst.msk [vmem:[#allocation2] sm:$0xff] %vm96_vm0, %v1282_v30 }
 0x6e2   :  { %v1275_v32 = vsel %vm1274_vm4, %v1430_v17, %v1271_v53 }
 0x6e3   :  { %v1277_v20 = vmul.f32 %v1275_v32, %v1243_v7 }
 0x6e5   :  { %v1280_v33 = vmul.f32 %v1387_v19, %v1277_v20 }
 0x6e7   :  { %v1283_v34 = vadd.f32 %v1388_v26, %v1280_v33 }
 0x6e9   :  { %1285 = vst.msk [vmem:[#allocation2 + $0x8] sm:$0xff] %vm96_vm0, %v1283_v34 }
 0x6ea   :  { %1298 = dma.vmem_to_hbm [thread:$0]  %s1291_s22, 256, %s1293_s25, [#allocation3], %s1461_s7, %s1461_s7, %s1462_s26  }
 0x6eb   :  { %1455 = dma.done.wait [#allocation3], 256  }
 0x6ec   :  { %1456 = vsyncadd [#allocation3], 4294967040 }
 0x6ed   :  { %1303 = vsyncpa [#allocation3], 1 }

</bundles_post_ra>
